<compile_context>
chip_gen: v7x
topology: tpu7x:2x2x1
jax: 0.10.0
libtpu: 0.0.40
codegen_flags: <defaults>
</compile_context>

<pallas_src>
import jax
import jax.numpy as jnp
from jax import lax
from jax.experimental import pallas as pl
from jax.experimental.pallas import tpu as pltpu

MARGIN = 5.0
EPS = 1e-6  # F.pairwise_distance default eps (added to the difference)


def _pick_block_rows(d, itemsize, budget_bytes=16 * 1024 * 1024, max_rows=8192):
    """Rows per tile sized from the full per-row VMEM working set:
       2 inputs x 2 pipeline buffers at wire dtype   -> 4 * d * itemsize
       ~3 live f32 temporaries (x1_f32, x2_f32, diff) -> 12 * d
       y tile (f32, double-buffered) + per-row temps  -> ~16 bytes
    """
    per_row = 4 * d * itemsize + 12 * d + 16
    tb = budget_bytes // max(per_row, 1)
    return max(8, min(tb, max_rows))


def _make_kernel(margin, eps, true_b, tb, may_mask):
    def kernel(x1_ref, x2_ref, y_ref, o_ref):
        c = pl.program_id(0)              # partial-sum slot (parallel axis)
        i = pl.program_id(1)              # tile step within this part (arbitrary axis)
        inner = pl.num_programs(1)
        gstep = c * inner + i             # unclamped global tile index

        @pl.when(i == 0)
        def _init():
            o_ref[...] = jnp.zeros_like(o_ref)

        # Upcast in-kernel: bf16 inputs stream at half the HBM bytes,
        # math stays f32 (required on v5e, harmless elsewhere).
        x1 = x1_ref[...].astype(jnp.float32)
        x2 = x2_ref[...].astype(jnp.float32)
        y = y_ref[...].astype(jnp.float32)

        diff = x1 - x2 + eps                                      # (tb, D)
        sq_sum = jnp.sum(diff * diff, axis=-1, keepdims=True)     # (tb, 1) == d^2
        dist = jnp.sqrt(sq_sum)                                   # margin branch only (EUP)

        pos = y * sq_sum                                          # y * d^2 (no sqrt round-trip)
        neg = (1.0 - y) * jnp.square(jnp.maximum(margin - dist, 0.0))
        per_pair = pos + neg                                      # (tb, 1)

        if may_mask:
            # A tile is "full" iff all tb of its rows lie inside the true batch.
            full_tile = (gstep + 1) * tb <= true_b

            @pl.when(full_tile)
            def _acc_full():
                o_ref[...] += jnp.sum(per_pair)

            @pl.when(jnp.logical_not(full_tile))
            def _acc_masked():
                # Ragged / overshoot tile: discard garbage rows (handles any NaN/Inf).
                row = gstep * tb + lax.broadcasted_iota(jnp.int32, (tb, 1), 0)
                masked = jnp.where(row < true_b, per_pair, 0.0)
                o_ref[...] += jnp.sum(masked)
        else:
            o_ref[...] += jnp.sum(per_pair)

    return kernel


def contrastive_loss(out_1, out_2, y, *, margin=MARGIN, eps=EPS, block_rows=None):
    """out_1, out_2: [B, D] (f32 or bf16); y: [B] -> scalar f32 loss."""
    B, D = out_1.shape
    itemsize = jnp.dtype(out_1.dtype).itemsize

    # Tile rows: byte-budget sized, sublane aligned, no larger than the batch.
    tb = _pick_block_rows(D, itemsize) if block_rows is None else int(block_rows)
    tb = max(8, (tb // 8) * 8)
    if B >= 8:
        tb = min(tb, (B // 8) * 8)

    nb = (B + tb - 1) // tb                 # number of row tiles (last one may be ragged)
    num_parts = 2 if nb >= 2 else 1         # split the stream across TCs (helps v7x)
    inner = (nb + num_parts - 1) // num_parts
    overshoot = inner * num_parts != nb
    may_mask = (B % tb != 0) or overshoot

    y2d = y.reshape(B, 1).astype(jnp.float32)

    def row_map(c, i):
        blk = c * inner + i
        if overshoot:
            # Clamp the DMA to a valid tile; the in-kernel mask (keyed on the
            # unclamped global step) zeroes the duplicate contribution.
            blk = jnp.minimum(blk, nb - 1)
        return (blk, 0)

    kernel = _make_kernel(float(margin), float(eps), B, tb, may_mask)

    cost = pl.CostEstimate(
        flops=int(5 * B * D + 10 * B),
        transcendentals=int(B),
        bytes_accessed=int(2 * B * D * itemsize + B * 4 + num_parts * 8 * 128 * 4),
    )

    partials = pl.pallas_call(
        kernel,
        out_shape=jax.ShapeDtypeStruct((num_parts, 8, 128), jnp.float32),
        grid=(num_parts, inner),
        in_specs=[
            pl.BlockSpec((tb, D), row_map),
            pl.BlockSpec((tb, D), row_map),
            pl.BlockSpec((tb, 1), row_map),
        ],
        out_specs=pl.BlockSpec((1, 8, 128), lambda c, i: (c, 0, 0)),
        compiler_params=pltpu.CompilerParams(
            dimension_semantics=("parallel", "arbitrary"),
            vmem_limit_bytes=32 * 1024 * 1024,
        ),
        cost_estimate=cost,
    )(out_1, out_2, y2d)

    return jnp.sum(partials[:, 0, 0]) / jnp.float32(B)


def contrastive_loss_ref(out_1, out_2, y):
    # Pure-JAX reference mirroring the PyTorch module (f32 math).
    x1 = out_1.astype(jnp.float32)
    x2 = out_2.astype(jnp.float32)
    diff = x1 - x2 + EPS
    dist = jnp.sqrt(jnp.sum(diff * diff, axis=-1))
    loss = y * dist**2 + (1.0 - y) * jnp.square(jnp.clip(MARGIN - dist, 0.0, None))
    return jnp.mean(loss)


if __name__ == "__main__":
    key = jax.random.PRNGKey(0)

    def check(B, D, dtype=jnp.float32, tol=1e-5, **kwargs):
        k = jax.random.fold_in(key, B * 1000 + D)
        k1, k2, k3 = jax.random.split(k, 3)
        x1 = jax.random.normal(k1, (B, D), dtype=jnp.float32).astype(dtype)
        x2 = jax.random.normal(k2, (B, D), dtype=jnp.float32).astype(dtype)
        y = jax.random.bernoulli(k3, 0.5, (B,)).astype(jnp.float32)

        loss = contrastive_loss(x1, x2, y, **kwargs)
        jax.block_until_ready(loss)

        ref = contrastive_loss_ref(x1, x2, y)
        assert jnp.allclose(loss, ref, rtol=tol, atol=tol), (B, D, loss, ref)

    check(8, 32)                          # single tile, single partial
    check(19, 32)                         # ragged last tile -> masked rows
    check(40, 32, block_rows=16)          # multi-tile, 2 partials, clamped overshoot tile
    check(24, 64, dtype=jnp.bfloat16, tol=1e-4)  # native bf16 wire, f32 in-kernel math

    print("KERNEL_OK")
</pallas_src>

<mosaic_0001>
module attributes {stable_mosaic.version = 11 : i64} {
  func.func @kernel(%arg0: i32, %arg1: i32, %arg2: memref<8x32xf32, #tpu.memory_space<vmem>>, %arg3: memref<8x32xf32, #tpu.memory_space<vmem>>, %arg4: memref<8x1xf32, #tpu.memory_space<vmem>>, %arg5: memref<1x8x128xf32, #tpu.memory_space<vmem>>) attributes {dimension_semantics = [#tpu.dimension_semantics<parallel>, #tpu.dimension_semantics<arbitrary>], iteration_bounds = array<i64: 1, 1>, scalar_prefetch = 0 : i64, scratch_operands = 0 : i64, tpu.core_type = #tpu.core_type<tc>, window_params = [{transform_indices = @transform_0, window_bounds = array<i64: 8, 32>}, {transform_indices = @transform_1, window_bounds = array<i64: 8, 32>}, {transform_indices = @transform_2, window_bounds = array<i64: 8, 1>}, {transform_indices = @transform_3, window_bounds = array<i64: 1, 8, 128>}]} {
    %c0_i32 = arith.constant 0 : i32
    %0 = arith.cmpi eq, %arg1, %c0_i32 : i32
    %1 = arith.extui %0 : i1 to i32
    %c0_i32_0 = arith.constant 0 : i32
    %2 = arith.cmpi ne, %1, %c0_i32_0 : i32
    scf.if %2 {
      %cst_17 = arith.constant 0.000000e+00 : f32
      %31 = vector.broadcast %cst_17 : f32 to vector<1x8x128xf32>
      %c0_18 = arith.constant 0 : index
      %c0_19 = arith.constant 0 : index
      %c0_20 = arith.constant 0 : index
      %32 = vector.load %arg5[%c0_18, %c0_19, %c0_20] : memref<1x8x128xf32, #tpu.memory_space<vmem>>, vector<1x8x128xf32>
      tpu.vector_store %arg5[%c0_18, %c0_19, %c0_20], %31 {strides = array<i32>} : memref<1x8x128xf32, #tpu.memory_space<vmem>>, vector<1x8x128xf32>,
    } else {
    }
    %c0 = arith.constant 0 : index
    %c0_1 = arith.constant 0 : index
    %3 = vector.load %arg2[%c0, %c0_1] : memref<8x32xf32, #tpu.memory_space<vmem>>, vector<8x32xf32>
    %c0_2 = arith.constant 0 : index
    %c0_3 = arith.constant 0 : index
    %4 = vector.load %arg3[%c0_2, %c0_3] : memref<8x32xf32, #tpu.memory_space<vmem>>, vector<8x32xf32>
    %c0_4 = arith.constant 0 : index
    %c0_5 = arith.constant 0 : index
    %5 = vector.load %arg4[%c0_4, %c0_5] : memref<8x1xf32, #tpu.memory_space<vmem>>, vector<8x1xf32>
    %6 = arith.subf %3, %4 : vector<8x32xf32>
    %cst = arith.constant 9.99999997E-7 : f32
    %7 = vector.broadcast %cst : f32 to vector<8x32xf32>
    %8 = arith.addf %6, %7 : vector<8x32xf32>
    %9 = arith.mulf %8, %8 : vector<8x32xf32>
    %cst_6 = arith.constant dense<0.000000e+00> : vector<8xf32>
    %10 = vector.multi_reduction <add>, %9, %cst_6 [1] : vector<8x32xf32> to vector<8xf32>
    %11 = vector.shape_cast %10 : vector<8xf32> to vector<8x1xf32>
    %12 = math.sqrt %11 : vector<8x1xf32>
    %13 = arith.mulf %5, %11 : vector<8x1xf32>
    %cst_7 = arith.constant 1.000000e+00 : f32
    %14 = vector.broadcast %cst_7 : f32 to vector<8x1xf32>
    %15 = arith.subf %14, %5 : vector<8x1xf32>
    %cst_8 = arith.constant 5.000000e+00 : f32
    %16 = vector.broadcast %cst_8 : f32 to vector<8x1xf32>
    %17 = arith.subf %16, %12 : vector<8x1xf32>
    %cst_9 = arith.constant 0.000000e+00 : f32
    %18 = vector.broadcast %cst_9 : f32 to vector<8x1xf32>
    %19 = arith.maximumf %17, %18 : vector<8x1xf32>
    %20 = arith.mulf %19, %19 : vector<8x1xf32>
    %21 = arith.mulf %15, %20 : vector<8x1xf32>
    %22 = arith.addf %13, %21 : vector<8x1xf32>
    %c0_10 = arith.constant 0 : index
    %c0_11 = arith.constant 0 : index
    %c0_12 = arith.constant 0 : index
    %23 = vector.load %arg5[%c0_10, %c0_11, %c0_12] : memref<1x8x128xf32, #tpu.memory_space<vmem>>, vector<1x8x128xf32>
    %24 = vector.shape_cast %22 : vector<8x1xf32> to vector<1x8x1xf32>
    %cst_13 = arith.constant dense<0.000000e+00> : vector<1xf32>
    %25 = vector.multi_reduction <add>, %24, %cst_13 [1, 2] : vector<1x8x1xf32> to vector<1xf32>
    %26 = vector.shape_cast %25 : vector<1xf32> to vector<1x1x1xf32>
    %27 = vector.extract %26[0, 0, 0] : f32 from vector<1x1x1xf32>
    %28 = vector.broadcast %27 : f32 to vector<1x8x128xf32>
    %29 = arith.addf %23, %28 : vector<1x8x128xf32>
    %c0_14 = arith.constant 0 : index
    %c0_15 = arith.constant 0 : index
    %c0_16 = arith.constant 0 : index
    %30 = vector.load %arg5[%c0_14, %c0_15, %c0_16] : memref<1x8x128xf32, #tpu.memory_space<vmem>>, vector<1x8x128xf32>
    tpu.vector_store %arg5[%c0_14, %c0_15, %c0_16], %29 {strides = array<i32>} : memref<1x8x128xf32, #tpu.memory_space<vmem>>, vector<1x8x128xf32>,
    return
  }
  func.func @transform_0(%arg0: i32, %arg1: i32) -> (i32, i32) {
    %c1_i32 = arith.constant 1 : i32
    %0 = arith.muli %arg0, %c1_i32 : i32
    %1 = arith.addi %0, %arg1 : i32
    %c0_i32 = arith.constant 0 : i32
    %c0_i32_0 = arith.constant 0 : i32
    return %1, %c0_i32 : i32, i32
  }
  func.func @transform_1(%arg0: i32, %arg1: i32) -> (i32, i32) {
    %c1_i32 = arith.constant 1 : i32
    %0 = arith.muli %arg0, %c1_i32 : i32
    %1 = arith.addi %0, %arg1 : i32
    %c0_i32 = arith.constant 0 : i32
    %c0_i32_0 = arith.constant 0 : i32
    return %1, %c0_i32 : i32, i32
  }
  func.func @transform_2(%arg0: i32, %arg1: i32) -> (i32, i32) {
    %c1_i32 = arith.constant 1 : i32
    %0 = arith.muli %arg0, %c1_i32 : i32
    %1 = arith.addi %0, %arg1 : i32
    %c0_i32 = arith.constant 0 : i32
    %c0_i32_0 = arith.constant 0 : i32
    return %1, %c0_i32 : i32, i32
  }
  func.func @transform_3(%arg0: i32, %arg1: i32) -> (i32, i32, i32) {
    %c0_i32 = arith.constant 0 : i32
    %c0_i32_0 = arith.constant 0 : i32
    %c0_i32_1 = arith.constant 0 : i32
    return %arg0, %c0_i32, %c0_i32_0 : i32, i32, i32
  }
}

</mosaic_0001>

<bundles_post_ra>
// kernel: tpu_custom_call.1
= control target key start
LH: loop header
LB: loop body
LE: loop exit
PB: predicated region body
PF: predicated region fallthrough
CT: control target
= control target key end

     0   :  { %8 = vsyncpa [#allocation3], 0  ;;  %s243_s0 = inlined_call_operand.vmem [shape: f32[8,32], index: 0, kind: input, shape index: {}]   ;;  %s244_s1 = inlined_call_operand.hbm [shape: f32[8,32], index: 1, kind: input, shape index: {}]   ;;  %s245_s2 = inlined_call_operand.vmem [shape: f32[8,1], index: 2, kind: input, shape index: {}]   ;;  %s246_s3 = inlined_call_operand.hbm [shape: f32[1,8,128], index: 3, kind: output, shape index: {}]  }
   0x1   :  { %9 = vsyncpa [#allocation4], 0  ;;  %s191_s12 = smov [#allocation2]   ;;  %s143_s16 = scalar_lea.hbm %s244_s1, 128 }
   0x2   :  { %s27_s13 = sshll.u32 %s191_s12, 4  ;;  %p144_p0 = scmp.ne.s32.totalorder %s244_s1, %s143_s16  ;;  %s28_s13 = int_to_ptr.vmem [resolvable:$true] %s27_s13 }
   0x3   :  { %p147_p1 = scmp.lt.u32.totalorder %s143_s16, %s244_s1 }
   0x5   :  { %p149_p2 = pnand %p147_p1, %p144_p0 }
   0x7   :  { %152 = shalt.err (!%p149_p2)
}
   0x8   :  { %s153_s21 = scalar_lea.vmem %s28_s13, 128  ;;  %p158_p4 = scmp.lt.s32.totalorder %s28_s13, %s28_s13 }
   0x9   :  { %p154_p3 = scmp.ne.s32.totalorder %s28_s13, %s153_s21  ;;  %p159_p5 = scmp.lt.s32.totalorder %s153_s21, %s153_s21 }
   0xb   :  { %p160_p6 = por %p159_p5, %p158_p4 }
   0xd   :  { %p161_p7 = pnand %p160_p6, %p154_p3 }
   0xf   :  { %164 = shalt.err (!%p161_p7)
}
  0x10   :  { %30 = dma.hbm_to_vmem [thread:$0]  %s244_s1, 128, %s28_s13, [#allocation3]  }
  0x11   :  { %187 = dma.done.wait [#allocation3], 128  }
  0x12   :  { %188 = vsyncadd [#allocation3], 4294967168  ;;  %v70_v0 = vld [vmem:[%s243_s0] sm:$0xff]  ;;  %vm76_vm0 = vcmask 261120   ;;  %vm95_vm3 = vcmask 7168   ;;  %s192_s0 = smov [#allocation5]  }
  0x13   :  { %v71_v1 = vld [vmem:[#allocation2] sm:$0xff]  ;;  %s115_s27 = sshll.u32 %s192_s0, 4  ;;  %s116_s27 = int_to_ptr.vmem [resolvable:$true] %s115_s27 }
  0x14   :  { %v73_v2 = vsub.f32 %v70_v0, %v71_v1  ;;  %v72_v13 = vld [vmem:[%s245_s2] sm:$0xff]  ;;  %s165_s28 = scalar_lea.vmem %s116_s27, 128  ;;  %p170_p9 = scmp.lt.s32.totalorder %s116_s27, %s116_s27 }
  0x15   :  { %v88_v14 = vsub.f32 1.0, %v72_v13  ;;  %p166_p8 = scmp.ne.s32.totalorder %s116_s27, %s165_s28  ;;  %p171_p10 = scmp.lt.s32.totalorder %s165_s28, %s165_s28 }
  0x16   :  { %v74_v3 = vadd.f32 1e-06, %v73_v2 }
  0x17   :  { %p172_p11 = por %p171_p10, %p170_p9 }
  0x18   :  { %v75_v4 = vmul.f32 %v74_v3, %v74_v3 }
  0x19   :  { %p173_p12 = pnand %p172_p11, %p166_p8 }
  0x1a   :  { %v77_v5 = vsel %vm76_vm0, %v75_v4, 0.0 }
  0x1b   :  { %78 = vadd.xlane.f32.xlu0 %v77_v5 }
  0xa8   :  { %v79_v6 = vpop.xlane.xlu0 %78 }
  0xa9   :  { %141 = vrsqrt.f32 %v79_v6  ;;  %vm82_vm1 = vcmp.eq.f32.partialorder %v79_v6, inf  ;;  %v85_v9 = vand.u32 2147483648, %v79_v6  ;;  %vm84_vm2 = vcmp.eq.f32.partialorder %v79_v6, 0.0 }
  0xaa   :  { %v87_v17 = vmul.f32 %v79_v6, %v72_v13 }
  0xb3   :  { %v142_v7 = vpop.eup %141 }
  0xb4   :  { %v81_v8 = vmul.f32 %v142_v7, %v79_v6 }
  0xb6   :  { %v83_v10 = vsel %vm82_vm1, %v79_v6, %v81_v8 }
  0xb7   :  { %v86_v11 = vsel %vm84_vm2, %v85_v9, %v83_v10 }
  0xb8   :  { %v89_v12 = vsub.f32 5.0, %v86_v11 }
  0xba   :  { %v90_v15 = vmax.f32 %v89_v12, 0.0 }
  0xbc   :  { %v91_v16 = vmul.f32 %v90_v15, %v90_v15 }
  0xbe   :  { %v92_v18 = vmul.f32 %v91_v16, %v88_v14 }
  0xc0   :  { %v93_v19 = vadd.f32 %v92_v18, %v87_v17 }
  0xc2   :  { %v96_v20 = vsel %vm95_vm3, %v93_v19, 0.0 }
  0xc3   :  { %97 = vadd.xlane.f32.xlu0 %v96_v20 }
 0x150   :  { %v98_v21 = vpop.xlane.xlu0 %97 }
 0x151   :  { %v99_v22 = vrot.slane %v98_v21, 4 }
 0x153   :  { %v100_v23 = vadd.f32 %v99_v22, %v98_v21 }
 0x155   :  { %v101_v24 = vrot.slane %v100_v23, 2 }
 0x157   :  { %v102_v25 = vadd.f32 %v101_v24, %v100_v23 }
 0x159   :  { %v103_v26 = vrot.slane %v102_v25, 1 }
 0x15b   :  { %v104_v27 = vadd.f32 %v103_v26, %v102_v25 }
 0x15d   :  { %136 = vpush %v104_v27 }
 0x18e   :  { %s137_s2 = spop %136 }
 0x18f   :  { %v106_v28 = vstv %s137_s2 }
 0x190   :  { %108 = vst [vmem:[#allocation5] sm:$0xff] %v106_v28 }
 0x191   :  { %176 = shalt.err (!%p173_p12)
}
 0x192   :  { %s177_s4 = scalar_lea.hbm %s246_s3, 128 }
 0x193   :  { %p178_p13 = scmp.ne.s32.totalorder %s246_s3, %s177_s4  ;;  %p181_p0 = scmp.lt.u32.totalorder %s177_s4, %s246_s3 }
 0x195   :  { %p183_p1 = pnand %p181_p0, %p178_p13 }
 0x197   :  { %186 = shalt.err (!%p183_p1)
}
 0x198   :  { %118 = dma.vmem_to_hbm [thread:$0]  %s116_s27, 128, %s246_s3, [#allocation4]  }
 0x199   :  { %189 = dma.done.wait [#allocation4], 128  }
 0x19a   :  { %190 = vsyncadd [#allocation4], 4294967168 }
 0x19b   :  { %122 = vsyncpa [#allocation3], 1 }
 0x19c   :  { %123 = vsyncpa [#allocation4], 1 }

</bundles_post_ra>
